<compile_context>
chip_gen: v6e
topology: v6e:2x2x1
jax: 0.10.0
libtpu: 0.0.40
codegen_flags: <defaults>
</compile_context>

<pallas_src>
import math

import jax
import jax.numpy as jnp
from jax.experimental import pallas as pl
from jax.experimental.pallas import tpu as pltpu


def _round_up(n, m):
    return ((n + m - 1) // m) * m


def _coxnet_kernel(x_ref, w_ref, b_ref, out_ref):
    # x_ref: [tile_b, D1] (compute dtype), w_ref: [1, D1] (compute dtype),
    # b_ref: [1, 1] f32, out_ref: [1, tile_b] f32.
    # out[0, m] = sum_k w[0, k] * x[m, k]  -> lane-dense [1, tile_b] MXU result
    # (same contracted-on-last-dims pattern as q @ k.T in flash attention).
    y = jax.lax.dot_general(
        w_ref[...],
        x_ref[...],
        dimension_numbers=(((1,), (1,)), ((), ())),
        preferred_element_type=jnp.float32,
    )
    out_ref[...] = (y + b_ref[...]).astype(out_ref.dtype)


def coxnet_forward(x, w1, b1, w2, b2, *, block_b=1024, compute_dtype=None):
    """Fused CoxNet forward. x: [B, D1] -> out: [B, 1] (float32)."""
    B, D1 = x.shape
    H = w1.shape[1]
    assert w1.shape == (D1, H)
    assert b1.shape == (1, H)
    assert w2.shape == (H, 1)
    assert b2.shape == (1, 1)
    assert block_b % 128 == 0

    # Algebraic collapse of the two activation-free Linears (same affine map).
    w_row = jnp.dot(w1, w2, preferred_element_type=jnp.float32).T      # [1, D1]
    b = (jnp.dot(b1, w2, preferred_element_type=jnp.float32) + b2)      # [1, 1]
    b = b.astype(jnp.float32)

    if compute_dtype is not None:
        x = x.astype(compute_dtype)
        w_row = w_row.astype(compute_dtype)

    # Batch tiling: tile_b is a multiple of 128 so the transposed output block is
    # lane-dense; pad the batch with zeros only when B is not already aligned.
    tile_b = min(block_b, _round_up(max(B, 1), 128))
    b_pad = _round_up(B, tile_b)
    if b_pad != B:
        x = jnp.pad(x, ((0, b_pad - B), (0, 0)))
    grid = (b_pad // tile_b,)

    out_t = pl.pallas_call(
        _coxnet_kernel,
        out_shape=jax.ShapeDtypeStruct((1, b_pad), jnp.float32),
        grid=grid,
        in_specs=[
            pl.BlockSpec((tile_b, D1), lambda i: (i, 0)),  # x: streamed over batch tiles
            pl.BlockSpec((1, D1), lambda i: (0, 0)),       # collapsed weight: VMEM-resident
            pl.BlockSpec((1, 1), lambda i: (0, 0)),        # collapsed bias:   VMEM-resident
        ],
        out_specs=pl.BlockSpec((1, tile_b), lambda i: (0, i)),  # lane-dense (transposed) output
        compiler_params=pltpu.CompilerParams(
            dimension_semantics=("parallel",),
        ),
    )(x, w_row, b)

    return out_t[0, :B].reshape(B, 1)


def init_coxnet_params(key, d1, hidden2):
    """Deterministic init mimicking torch.nn.Linear default (uniform +/- 1/sqrt(fan_in))."""
    h = hidden2 + 1
    k1, k2, k3, k4 = jax.random.split(key, 4)
    bound1 = 1.0 / math.sqrt(d1)
    bound2 = 1.0 / math.sqrt(h)
    w1 = jax.random.uniform(k1, (d1, h), jnp.float32, -bound1, bound1)
    b1 = jax.random.uniform(k2, (1, h), jnp.float32, -bound1, bound1)
    w2 = jax.random.uniform(k3, (h, 1), jnp.float32, -bound2, bound2)
    b2 = jax.random.uniform(k4, (1, 1), jnp.float32, -bound2, bound2)
    return w1, b1, w2, b2


if __name__ == "__main__":
    # nn_config['hidden_layers'] = [*, 32, 16]  ->  layer1: 32 -> 17, layer2: 17 -> 1
    B, D1, HIDDEN2 = 8, 32, 16

    key = jax.random.PRNGKey(0)
    kx, kp = jax.random.split(key)
    x = jax.random.normal(kx, (B, D1), jnp.float32)
    k_means_label = jnp.zeros((B,), jnp.int32)  # unused by the forward pass (matches PyTorch)

    w1, b1, w2, b2 = init_coxnet_params(kp, D1, HIDDEN2)

    # f32 path.
    out = coxnet_forward(x, w1, b1, w2, b2)
    out = jax.block_until_ready(out)

    # Reference check in plain JAX (layer-by-layer, like the PyTorch module).
    ref = (x @ w1 + b1) @ w2 + b2
    assert out.shape == (B, 1), out.shape
    assert jnp.allclose(out, ref, atol=1e-4, rtol=1e-4), (out, ref)

    # bf16 fast path (v5e/v6e friendly): bf16 operands, f32 MXU accumulation.
    out_bf16 = jax.block_until_ready(
        coxnet_forward(x, w1, b1, w2, b2, compute_dtype=jnp.bfloat16)
    )
    assert out_bf16.shape == (B, 1), out_bf16.shape
    assert jnp.allclose(out_bf16, ref, atol=5e-2, rtol=5e-2), (out_bf16, ref)

    print("KERNEL_OK")
</pallas_src>

<mosaic_0001>
module attributes {stable_mosaic.version = 11 : i64} {
  func.func @_coxnet_kernel(%arg0: i32, %arg1: memref<128x32xf32, #tpu.memory_space<vmem>>, %arg2: memref<1x32xf32, #tpu.memory_space<vmem>>, %arg3: memref<1x1xf32, #tpu.memory_space<vmem>>, %arg4: memref<1x128xf32, #tpu.memory_space<vmem>>) attributes {dimension_semantics = [#tpu.dimension_semantics<parallel>], iteration_bounds = array<i64: 1>, scalar_prefetch = 0 : i64, scratch_operands = 0 : i64, tpu.core_type = #tpu.core_type<tc>, window_params = [{transform_indices = @transform_0, window_bounds = array<i64: 128, 32>}, {pipeline_mode = #tpu.pipeline_mode<synchronous>, transform_indices = @transform_1, window_bounds = array<i64: 1, 32>}, {pipeline_mode = #tpu.pipeline_mode<synchronous>, transform_indices = @transform_2, window_bounds = array<i64: 1, 1>}, {transform_indices = @transform_3, window_bounds = array<i64: 1, 128>}]} {
    %c0 = arith.constant 0 : index
    %c0_0 = arith.constant 0 : index
    %0 = vector.load %arg2[%c0, %c0_0] : memref<1x32xf32, #tpu.memory_space<vmem>>, vector<1x32xf32>
    %c0_1 = arith.constant 0 : index
    %c0_2 = arith.constant 0 : index
    %1 = vector.load %arg1[%c0_1, %c0_2] : memref<128x32xf32, #tpu.memory_space<vmem>>, vector<128x32xf32>
    %cst = arith.constant dense<0.000000e+00> : vector<1x128xf32>
    %2 = tpu.matmul %0, %1, %cst {dimension_numbers = #tpu.dot_dimension_numbers<[1], [1], [0], [0], [0, 0, 1, 0], [], []>} : vector<1x32xf32>, vector<128x32xf32>, vector<1x128xf32> -> vector<1x128xf32>
    %c0_3 = arith.constant 0 : index
    %c0_4 = arith.constant 0 : index
    %3 = vector.load %arg3[%c0_3, %c0_4] : memref<1x1xf32, #tpu.memory_space<vmem>>, vector<1x1xf32>
    %4 = vector.broadcast %3 : vector<1x1xf32> to vector<1x128xf32>
    %5 = arith.addf %2, %4 : vector<1x128xf32>
    %c0_5 = arith.constant 0 : index
    %c0_6 = arith.constant 0 : index
    %6 = vector.load %arg4[%c0_5, %c0_6] : memref<1x128xf32, #tpu.memory_space<vmem>>, vector<1x128xf32>
    tpu.vector_store %arg4[%c0_5, %c0_6], %5 {strides = array<i32>} : memref<1x128xf32, #tpu.memory_space<vmem>>, vector<1x128xf32>,
    return
  }
  func.func @transform_0(%arg0: i32) -> (i32, i32) {
    %c0_i32 = arith.constant 0 : i32
    %c0_i32_0 = arith.constant 0 : i32
    return %arg0, %c0_i32 : i32, i32
  }
  func.func @transform_1(%arg0: i32) -> (i32, i32) {
    %c0_i32 = arith.constant 0 : i32
    %c0_i32_0 = arith.constant 0 : i32
    %c0_i32_1 = arith.constant 0 : i32
    return %c0_i32, %c0_i32_0 : i32, i32
  }
  func.func @transform_2(%arg0: i32) -> (i32, i32) {
    %c0_i32 = arith.constant 0 : i32
    %c0_i32_0 = arith.constant 0 : i32
    %c0_i32_1 = arith.constant 0 : i32
    return %c0_i32, %c0_i32_0 : i32, i32
  }
  func.func @transform_3(%arg0: i32) -> (i32, i32) {
    %c0_i32 = arith.constant 0 : i32
    %c0_i32_0 = arith.constant 0 : i32
    return %c0_i32, %arg0 : i32, i32
  }
}

</mosaic_0001>

<bundles_post_ra>
// kernel: tpu_custom_call.1
= control target key start
LH: loop header
LB: loop body
LE: loop exit
PB: predicated region body
PF: predicated region fallthrough
CT: control target
= control target key end

     0   :  { %s375_s0 = inlined_call_operand.vmem [shape: f32[128,32], index: 0, kind: input, shape index: {}]   ;;  %s376_s1 = inlined_call_operand.vmem [shape: f32[1,32], index: 1, kind: input, shape index: {}]   ;;  %s377_s2 = inlined_call_operand.<no memory space> [shape: f32[1,1], index: 2, kind: input, shape index: {}]   ;;  %s378_s3 = inlined_call_operand.hbm [shape: f32[1,128], index: 3, kind: output, shape index: {}]  }
   0x1   :  { %v8_v0 = vstv %s377_s2 }
   0x2   :  { %9 = vst [vmem:[#allocation2] sm:$0x1] %v8_v0 }
   0x3   :  { %v33_v1 = vld [vmem:[%s375_s0 + $0x78] sm:$0xff]  ;;  %vm44_vm0 = vcmask 261120   ;;  %v277_v2 = vmov 0.0   ;;  %vm278_vm1 = vmmov 0   ;;  %v279_v3 = vmov 0   ;;  %v32_v4 = vld [vmem:[%s375_s0 + $0x70] sm:$0xff] }
   0x4   :  { %215 = vmatprep.subr.mxu0 %v277_v2  ;;  %247 = vmatprep.mubr.msk.f32.mxu0 %vm278_vm1, %v277_v2 }
   0x5   :  { %216 = vmatpush3.xpose.msk.msra.mxu0 %vm44_vm0, %v33_v1  ;;  %254 = vset.pattern.permute.xlu0 %v279_v3 }
   0x6   :  { %217 = vmatprep.subr.mxu0 %v277_v2 }
   0x9   :  { %v34_v5 = vld [vmem:[#allocation2] sm:$0x1]  ;;  %218 = vmatpush3.xpose.msk.msra.mxu0 %vm44_vm0, %v32_v4 }
   0xa   :  { %37 = vperm.xlu0 %254, %v34_v5  }
   0xb   :  { %10 = vsyncpa [#allocation4], 0  ;;  %219 = vmatprep.subr.mxu0 %v277_v2  ;;  %v31_v6 = vld [vmem:[%s375_s0 + $0x68] sm:$0xff]  ;;  %v30_v7 = vld [vmem:[%s375_s0 + $0x60] sm:$0xff]  ;;  %v40_v21 = vlaneseq  ;;  %s280_s19 = smov [#allocation3]  }
   0xc   :  { %v29_v8 = vld [vmem:[%s375_s0 + $0x58] sm:$0xff]  ;;  %v28_v9 = vld [vmem:[%s375_s0 + $0x50] sm:$0xff]  ;;  %v27_v10 = vld [vmem:[%s375_s0 + $0x48] sm:$0xff]  ;;  %s173_s20 = sshll.u32 %s280_s19, 4  ;;  %s174_s20 = int_to_ptr.vmem [resolvable:$true] %s173_s20 }
   0xd   :  { %220 = vmatpush3.xpose.msk.msra.mxu0 %vm44_vm0, %v31_v6  ;;  %v26_v11 = vld [vmem:[%s375_s0 + $0x40] sm:$0xff]  ;;  %v25_v12 = vld [vmem:[%s375_s0 + $0x38] sm:$0xff]  ;;  %v24_v13 = vld [vmem:[%s375_s0 + $0x30] sm:$0xff]  ;;  %v41_v22 = vshrl.u32 %v40_v21, 7  ;;  %s259_s21 = scalar_lea.vmem %s174_s20, 32  ;;  %p260_p1 = scmp.lt.s32.totalorder %s174_s20, %s174_s20 }
   0xe   :  { %221 = vmatprep.subr.mxu0 %v277_v2  ;;  %v23_v14 = vld [vmem:[%s375_s0 + $0x28] sm:$0xff]  ;;  %v22_v15 = vld [vmem:[%s375_s0 + $0x20] sm:$0xff]  ;;  %v21_v16 = vld [vmem:[%s375_s0 + $0x18] sm:$0xff] }
   0xf   :  { %v20_v17 = vld [vmem:[%s375_s0 + $0x10] sm:$0xff]  ;;  %v19_v18 = vld [vmem:[%s375_s0 + $0x8] sm:$0xff]  ;;  %v18_v19 = vld [vmem:[%s375_s0] sm:$0xff]  ;;  %v42_v23 = vsub.s32 0, %v41_v22  ;;  %s255_s0 = scalar_lea.vmem %s174_s20, 16 }
  0x10   :  { %v17_v20 = vld [vmem:[%s376_s1] sm:$0x1]  ;;  %p256_p0 = scmp.ne.s32.totalorder %s174_s20, %s255_s0  ;;  %p261_p2 = scmp.lt.s32.totalorder %s259_s21, %s255_s0 }
  0x11   :  { %222 = vmatpush3.xpose.msk.msra.mxu0 %vm44_vm0, %v30_v7 }
  0x12   :  { %223 = vmatprep.subr.mxu0 %v277_v2  ;;  %p262_p3 = por %p261_p2, %p260_p1 }
  0x14   :  { %p263_p4 = pnand %p262_p3, %p256_p0 }
  0x15   :  { %224 = vmatpush3.xpose.msk.msra.mxu0 %vm44_vm0, %v29_v8 }
  0x16   :  { %225 = vmatprep.subr.mxu0 %v277_v2 }
  0x19   :  { %226 = vmatpush3.xpose.msk.msra.mxu0 %vm44_vm0, %v28_v9 }
  0x1a   :  { %227 = vmatprep.subr.mxu0 %v277_v2 }
  0x1d   :  { %228 = vmatpush3.xpose.msk.msra.mxu0 %vm44_vm0, %v27_v10 }
  0x1e   :  { %229 = vmatprep.subr.mxu0 %v277_v2 }
  0x21   :  { %230 = vmatpush3.xpose.msk.msra.mxu0 %vm44_vm0, %v26_v11 }
  0x22   :  { %231 = vmatprep.subr.mxu0 %v277_v2 }
  0x25   :  { %232 = vmatpush3.xpose.msk.msra.mxu0 %vm44_vm0, %v25_v12 }
  0x26   :  { %233 = vmatprep.subr.mxu0 %v277_v2 }
  0x29   :  { %234 = vmatpush3.xpose.msk.msra.mxu0 %vm44_vm0, %v24_v13 }
  0x2a   :  { %235 = vmatprep.subr.mxu0 %v277_v2 }
  0x2d   :  { %236 = vmatpush3.xpose.msk.msra.mxu0 %vm44_vm0, %v23_v14 }
  0x2e   :  { %237 = vmatprep.subr.mxu0 %v277_v2 }
  0x31   :  { %238 = vmatpush3.xpose.msk.msra.mxu0 %vm44_vm0, %v22_v15 }
  0x32   :  { %239 = vmatprep.subr.mxu0 %v277_v2 }
  0x35   :  { %240 = vmatpush3.xpose.msk.msra.mxu0 %vm44_vm0, %v21_v16 }
  0x36   :  { %241 = vmatprep.subr.mxu0 %v277_v2 }
  0x39   :  { %242 = vmatpush3.xpose.msk.msra.mxu0 %vm44_vm0, %v20_v17 }
  0x3a   :  { %243 = vmatprep.subr.mxu0 %v277_v2 }
  0x3d   :  { %244 = vmatpush3.xpose.msk.msra.mxu0 %vm44_vm0, %v19_v18 }
  0x3e   :  { %245 = vmatprep.subr.mxu0 %v277_v2 }
  0x41   :  { %246 = vmatpush3.xpose.msk.msra.mxu0 %vm44_vm0, %v18_v19 }
  0x44   :  { %248 = vmatmul.mubr.msk.f32.vlgmr.msra.gmra.mxu0 %vm44_vm0, %v17_v20 }
  0x85   :  { %v38_v24 = vpop.permute.xlu0 %37 }
  0x86   :  { %v43_v25 = vrot.slane %v38_v24, %v42_v23 }
 0x104   :  { %v162_v26 = vpop.f32.mrf.mxu0 }
 0x105   :  { %v163_v27 = vadd.f32 %v162_v26, %v43_v25 }
 0x106   :  { %v249_v28 = vpop.f32.mrf.mxu0 }
 0x107   :  { %166 = vst [vmem:[#allocation3] sm:$0x1] %v163_v27 }
 0x108   :  { %266 = shalt.err (!%p263_p4)
}
 0x109   :  { %176 = dma.vmem_to_hbm [thread:$0]  %s174_s20, 16, %s378_s3, [#allocation4]  }
 0x10a   :  { %275 = dma.done.wait [#allocation4], 16  }
 0x10b   :  { %276 = vsyncadd [#allocation4], 4294967280 }
 0x10c   :  { %180 = vsyncpa [#allocation4], 1 }

</bundles_post_ra>
